<compile_context>
chip_gen: v7x
topology: tpu7x:2x2x1
jax: 0.10.0
libtpu: 0.0.40
codegen_flags: <defaults>
</compile_context>

<pallas_src>
import functools

import jax
import jax.numpy as jnp
from jax.experimental import pallas as pl
from jax.experimental.pallas import tpu as pltpu


def _linear1x1_kernel(x_ref, w_ref, b_ref, o_ref):
    # x_ref: (bn, C_in, tm)   w_ref: (C_out, C_in)   b_ref: (C_out, 1)
    # o_ref: (bn, C_out, tm)
    bn = x_ref.shape[0]
    w = w_ref[...]
    b = b_ref[...]
    # Small static loop over the batch block: each sample is a single
    # (C_out, C_in) @ (C_in, tm) MXU matmul stored straight into its output
    # row -- no transposes, short accumulator live range.
    for s in range(bn):
        acc = jnp.dot(w, x_ref[s], preferred_element_type=jnp.float32)
        o_ref[s] = (acc + b).astype(o_ref.dtype)


def _vmem_capacity_bytes():
    """Best-effort query of physical per-core VMEM.

    Falls back to the v7x-sized 64 MiB (conservative: only shrinks the tile
    budget on v5e/v6e, never overflows v7x).
    """
    try:
        info = pltpu.get_tpu_info()
        cap = getattr(info, "vmem_capacity_bytes", None)
        if cap:
            return int(cap)
    except Exception:
        pass
    return 64 * 1024 * 1024


def _choose_tiles(N, M, C_in, C_out, in_bytes, out_bytes):
    """Pick (bn, tm): batch block and lane (M) tile from a VMEM budget.

    tm always divides M exactly (or equals M), so no padding pass is needed.
    bn always divides N exactly.
    """
    small_vmem = _vmem_capacity_bytes() < 100 * 1024 * 1024     # v7x-class
    budget = (20 if small_vmem else 40) * 1024 * 1024           # pipelined tile budget

    # Per-sample, per-lane bytes of one grid step: double-buffered input and
    # output blocks (output in its REAL dtype) plus the f32 accumulator that
    # jnp.dot produces before the cast.
    per_col = 2 * C_in * in_bytes + 2 * C_out * out_bytes + 4 * C_out

    # ---- lane (M) tile ----------------------------------------------------
    if M % 128 == 0:
        lane_cap = max(128, (budget // max(per_col, 1)) // 128 * 128)
        tm = min(M, lane_cap)
        while M % tm != 0:          # largest 128-multiple tile dividing M
            tm -= 128
    else:
        tm = M                      # full-extent block: always legal, no padding

    # ---- batch (N) block --------------------------------------------------
    step_bytes = per_col * tm
    bn_cap = max(1, budget // max(step_bytes, 1))
    bn = 1
    for d in range(1, N + 1):       # largest divisor of N that fits the budget
        if N % d == 0 and d <= bn_cap:
            bn = d

    # ---- guarantee >= 2 grid points so both v7x TensorCores get work ------
    if (N // bn) * (M // tm) < 2:
        if bn > 1:
            for d in range(bn - 1, 0, -1):
                if N % d == 0 and N // d >= 2:
                    bn = d
                    break
        elif tm % 256 == 0:
            tm //= 2

    return bn, tm


@functools.partial(jax.jit, static_argnames=("use_bf16", "out_dtype", "interpret"))
def linear_1x1_conv(x_nchw, weight, bias, *, use_bf16=False, out_dtype=None,
                    interpret=False):
    """1x1 Conv2d with bias (== GraphWaveNet `linear`).

    x_nchw : (N, C_in, H, W)
    weight : (C_out, C_in) or (C_out, C_in, 1, 1)
    bias   : (C_out,)
    returns: (N, C_out, H, W) in `out_dtype` (default: x's dtype).
    """
    N, C_in, H, W = x_nchw.shape
    if weight.ndim == 4:                         # accept raw Conv2d weight
        weight = weight.reshape(weight.shape[0], weight.shape[1])
    C_out = weight.shape[0]
    M = H * W
    out_dtype = x_nchw.dtype if out_dtype is None else jnp.dtype(out_dtype)

    # Free reshape (NCHW is already contiguous as (N, C_in, H*W)); no transposes.
    x3 = x_nchw.reshape(N, C_in, M)
    w = weight                                   # (C_out, C_in)
    b = bias.reshape(C_out, 1).astype(jnp.float32)

    if use_bf16:
        # Halve HBM read traffic; MXU accumulates in f32, bias add stays f32.
        x3 = x3.astype(jnp.bfloat16)
        w = w.astype(jnp.bfloat16)

    in_bytes = jnp.dtype(x3.dtype).itemsize
    out_bytes = jnp.dtype(out_dtype).itemsize
    bn, tm = _choose_tiles(N, M, C_in, C_out, in_bytes, out_bytes)

    grid = (N // bn, M // tm)

    # Scoped-VMEM request: double-buffered x/out blocks, f32 accumulator,
    # resident (double-buffered) weight/bias, plus a margin for Mosaic
    # internals.  No 32 MiB floor; capped well below v7x's 64 MiB per-TC VMEM.
    tile_bytes = 2 * bn * tm * (C_in * in_bytes + C_out * out_bytes)
    acc_bytes = bn * C_out * tm * 4
    const_bytes = 2 * (C_out * C_in * in_bytes + C_out * 4)
    small_vmem = _vmem_capacity_bytes() < 100 * 1024 * 1024
    cap = (48 if small_vmem else 100) * 1024 * 1024
    vmem_limit = int(min(cap, tile_bytes + acc_bytes + const_bytes + (8 << 20)))

    out = pl.pallas_call(
        _linear1x1_kernel,
        out_shape=jax.ShapeDtypeStruct((N, C_out, M), out_dtype),
        grid_spec=pltpu.PrefetchScalarGridSpec(
            num_scalar_prefetch=0,
            grid=grid,
            in_specs=[
                pl.BlockSpec((bn, C_in, tm), lambda i, j: (i, 0, j)),
                # Weight/bias blocks have constant index_maps; they stay
                # VMEM-resident across the whole grid.
                pl.BlockSpec((C_out, C_in), lambda i, j: (0, 0)),
                pl.BlockSpec((C_out, 1), lambda i, j: (0, 0)),
            ],
            out_specs=pl.BlockSpec((bn, C_out, tm), lambda i, j: (i, 0, j)),
        ),
        compiler_params=pltpu.CompilerParams(
            dimension_semantics=("parallel", "parallel"),
            vmem_limit_bytes=vmem_limit,
        ),
        interpret=interpret,
    )(x3, w, b)

    return out.reshape(N, C_out, H, W)


def reference_1x1_conv(x_nchw, weight, bias):
    # Pure-JAX reference (same math as torch.nn.Conv2d kernel_size=1, bias=True).
    if weight.ndim == 4:
        weight = weight.reshape(weight.shape[0], weight.shape[1])
    return jnp.einsum("nchw,oc->nohw", x_nchw, weight) + bias[None, :, None, None]


if __name__ == "__main__":
    key = jax.random.PRNGKey(0)
    k_x, k_w, k_b, k_x2 = jax.random.split(key, 4)

    # --- main test: lane-aligned spatial size ------------------------------
    N, C_in, C_out, H, W = 2, 4, 8, 16, 16
    x = jax.random.normal(k_x, (N, C_in, H, W), dtype=jnp.float32)
    weight = jax.random.normal(k_w, (C_out, C_in), dtype=jnp.float32) * 0.1
    bias = jax.random.normal(k_b, (C_out,), dtype=jnp.float32) * 0.1
    ref = reference_1x1_conv(x, weight, bias)

    # f32 path (matches PyTorch Conv2d semantics).
    out = jax.block_until_ready(linear_1x1_conv(x, weight, bias))
    assert out.shape == (N, C_out, H, W)
    assert out.dtype == x.dtype
    assert jnp.allclose(out, ref, atol=1e-5, rtol=1e-5)

    # bf16-input path (halved read traffic); f32 accumulate + f32 output.
    out_bf = jax.block_until_ready(linear_1x1_conv(x, weight, bias, use_bf16=True))
    assert out_bf.shape == (N, C_out, H, W)
    assert jnp.allclose(out_bf, ref, atol=2e-2, rtol=2e-2)

    # bf16-in / bf16-out path (halved read AND write traffic).
    out_bf16o = jax.block_until_ready(
        linear_1x1_conv(x, weight, bias, use_bf16=True, out_dtype=jnp.bfloat16))
    assert out_bf16o.dtype == jnp.bfloat16
    assert jnp.allclose(out_bf16o.astype(jnp.float32), ref, atol=5e-2, rtol=5e-2)

    # --- ragged spatial size (M not a multiple of 128): full-extent block,
    #     no padding pass -----------------------------------------------------
    N2, H2, W2 = 3, 5, 13
    x2 = jax.random.normal(k_x2, (N2, C_in, H2, W2), dtype=jnp.float32)
    ref2 = reference_1x1_conv(x2, weight, bias)
    out2 = jax.block_until_ready(linear_1x1_conv(x2, weight, bias))
    assert out2.shape == (N2, C_out, H2, W2)
    assert jnp.allclose(out2, ref2, atol=1e-5, rtol=1e-5)

    print("KERNEL_OK")
</pallas_src>

<mosaic_0001>
module attributes {stable_mosaic.version = 11 : i64} {
  func.func @_linear1x1_kernel(%arg0: i32, %arg1: i32, %arg2: memref<1x4x256xf32, #tpu.memory_space<vmem>>, %arg3: memref<8x4xf32, #tpu.memory_space<vmem>>, %arg4: memref<8x1xf32, #tpu.memory_space<vmem>>, %arg5: memref<1x8x256xf32, #tpu.memory_space<vmem>>) attributes {dimension_semantics = [#tpu.dimension_semantics<parallel>, #tpu.dimension_semantics<parallel>], iteration_bounds = array<i64: 2, 1>, scalar_prefetch = 0 : i64, scratch_operands = 0 : i64, tpu.core_type = #tpu.core_type<tc>, window_params = [{transform_indices = @transform_0, window_bounds = array<i64: 1, 4, 256>}, {pipeline_mode = #tpu.pipeline_mode<synchronous>, transform_indices = @transform_1, window_bounds = array<i64: 8, 4>}, {pipeline_mode = #tpu.pipeline_mode<synchronous>, transform_indices = @transform_2, window_bounds = array<i64: 8, 1>}, {transform_indices = @transform_3, window_bounds = array<i64: 1, 8, 256>}]} {
    %c0 = arith.constant 0 : index
    %c0_0 = arith.constant 0 : index
    %0 = vector.load %arg3[%c0, %c0_0] : memref<8x4xf32, #tpu.memory_space<vmem>>, vector<8x4xf32>
    %c0_1 = arith.constant 0 : index
    %c0_2 = arith.constant 0 : index
    %1 = vector.load %arg4[%c0_1, %c0_2] : memref<8x1xf32, #tpu.memory_space<vmem>>, vector<8x1xf32>
    %c0_3 = arith.constant 0 : index
    %c0_4 = arith.constant 0 : index
    %c0_5 = arith.constant 0 : index
    %2 = vector.load %arg2[%c0_3, %c0_4, %c0_5] : memref<1x4x256xf32, #tpu.memory_space<vmem>>, vector<1x4x256xf32>
    %3 = vector.shape_cast %2 : vector<1x4x256xf32> to vector<4x256xf32>
    %cst = arith.constant dense<0.000000e+00> : vector<8x256xf32>
    %4 = tpu.matmul %0, %3, %cst {dimension_numbers = #tpu.dot_dimension_numbers<[1], [0], [0], [1], [0, 0, 1, 1], [], []>} : vector<8x4xf32>, vector<4x256xf32>, vector<8x256xf32> -> vector<8x256xf32>
    %5 = vector.broadcast %1 : vector<8x1xf32> to vector<8x256xf32>
    %6 = arith.addf %4, %5 : vector<8x256xf32>
    %c0_6 = arith.constant 0 : index
    %c0_7 = arith.constant 0 : index
    %c0_8 = arith.constant 0 : index
    %7 = vector.load %arg5[%c0_6, %c0_7, %c0_8] : memref<1x8x256xf32, #tpu.memory_space<vmem>>, vector<1x8x256xf32>
    %8 = vector.shape_cast %7 : vector<1x8x256xf32> to vector<8x256xf32>
    %9 = vector.shape_cast %6 : vector<8x256xf32> to vector<1x8x256xf32>
    tpu.vector_store %arg5[%c0_6, %c0_7, %c0_8], %9 {strides = array<i32>} : memref<1x8x256xf32, #tpu.memory_space<vmem>>, vector<1x8x256xf32>,
    return
  }
  func.func @transform_0(%arg0: i32, %arg1: i32) -> (i32, i32, i32) {
    %c0_i32 = arith.constant 0 : i32
    %c0_i32_0 = arith.constant 0 : i32
    return %arg0, %c0_i32, %arg1 : i32, i32, i32
  }
  func.func @transform_1(%arg0: i32, %arg1: i32) -> (i32, i32) {
    %c0_i32 = arith.constant 0 : i32
    %c0_i32_0 = arith.constant 0 : i32
    %c0_i32_1 = arith.constant 0 : i32
    return %c0_i32, %c0_i32_0 : i32, i32
  }
  func.func @transform_2(%arg0: i32, %arg1: i32) -> (i32, i32) {
    %c0_i32 = arith.constant 0 : i32
    %c0_i32_0 = arith.constant 0 : i32
    %c0_i32_1 = arith.constant 0 : i32
    return %c0_i32, %c0_i32_0 : i32, i32
  }
  func.func @transform_3(%arg0: i32, %arg1: i32) -> (i32, i32, i32) {
    %c0_i32 = arith.constant 0 : i32
    %c0_i32_0 = arith.constant 0 : i32
    return %arg0, %c0_i32, %arg1 : i32, i32, i32
  }
}

</mosaic_0001>

<bundles_post_ra>
// kernel: linear_1x1_conv.1
= control target key start
LH: loop header
LB: loop body
LE: loop exit
PB: predicated region body
PF: predicated region fallthrough
CT: control target
= control target key end

     0   :  { %s479_s12 = smov 0   ;;  %s481_s13 = smov 0   ;;  %s518_s0 = inlined_call_operand.vmem [shape: f32[2,4,256], index: 0, kind: input, shape index: {}]   ;;  %s519_s1 = inlined_call_operand.vmem [shape: f32[8,4], index: 1, kind: input, shape index: {}]   ;;  %s520_s2 = inlined_call_operand.vmem [shape: f32[8,1], index: 2, kind: input, shape index: {}]   ;;  %s521_s3 = inlined_call_operand.vmem [shape: f32[2,8,256], index: 3, kind: output, shape index: {}]  }
   0x1   :  { %s483_s14 = smov 0  }
   0x2 LB: > { %s25_s15 = sadd.s32 1, %s451_s13  ;;  %p393_p0 = scmp.ge.s32.totalorder %s455_s14, 1  ;;  %s455_s14 = sphi %s483_s14, %s13_s14   ;;  %s451_s13 = sphi %s481_s13, %s523_s13   ;;  %s447_s12 = sphi %s479_s12, %s522_s12  }
   0x3   : > { %p27_p1 = scmp.ge.s32.totalorder %s25_s15, 2  ;;  %p158_p2 = scmp.lt.s32.totalorder %s455_s14, 3 }
   0x5   : > { %s525_s15 = smov (%p27_p1, %s25_s15), 0  ;;  %p159_p3 = pnand %p393_p0, %p158_p2 }
   0x6   : > { %p191_p4 = scmp.lt.s32.totalorder (!%p159_p3), %s447_s12, 1  ;;  %v457_v0 = vmov (!%p159_p3), 0.0   ;;  %v458_v1 = vmov (!%p159_p3), 0   ;;  %v211_v2 = vld [vmem:[%s520_s2] sm:$0xff] (!%p159_p3)  ;;  %vm224_vm0 = vcmask (!%p159_p3), 1043456   ;;  %vm220_vm1 = vcmask (!%p159_p3), 31744  }
   0x7   : > { %162 = sbr.rel (%p159_p3) target bundleno = 238 (0xee), region = 32  ;;  %293 = vmatprep.mubr.f32.mxu0 (!%p159_p3), %v457_v0  ;;  %431 = vset.pattern.permute.xlu0 (!%p159_p3), %v458_v1  ;;  %v210_v5 = vld [vmem:[%s519_s1] sm:$0xff] (!%p159_p3) }
   0x8   : > { %215 = vperm.xlu0 (!%p159_p3), %431, %v211_v2  }
   0xe   : > { %s527_s12 = smov (!%p191_p4, %s447_s12), 1 }
   0xf   : > { %s403_s18 = sshll.u32 %s527_s12, 3  ;;  %s404_s24 = sshll.u32 %s527_s12, 4 }
  0x10   : > { %s198_s21 = scalar_lea.vmem %s518_s0, %s403_s18  ;;  %s208_s27 = scalar_lea.vmem %s521_s3, %s404_s24 }
  0x11   : > { %v212_v3 = vld [vmem:[%s198_s21] sm:$0xff] }
  0x12   : > { %v219_v4 = vcombine.high %v212_v3, %v212_v3 }
  0x14   : > { %398 = vmatprep.subr.msk.mxu0 %vm224_vm0, %v219_v4 }
  0x15   : > { %399 = vmatpush1.msk.msra.mxu0 %vm224_vm0, %v212_v3 }
  0x16   : > { %400 = vmatmul.mubr.msk.f32.vlgmr.msra.gmra.mrb[0].mxu0 %vm220_vm1, %v210_v5 }
  0x87   : > { %v216_v6 = vpop.permute.xlu0 %215 }
  0xe9   : > { %v295_v7 = vpop.f32.mrb[0].mxu0 }
  0xea   : > { %v296_v8 = vadd.f32 %v295_v7, %v216_v6  ;;  %v297_v9 = vpop.f32.mrb[1].mxu0 }
  0xeb   : > { %v298_v10 = vadd.f32 %v297_v9, %v216_v6 }
  0xec   : > { %300 = vst [vmem:[%s208_s27] sm:$0xff] %v296_v8 }
  0xed   : > { %301 = vst [vmem:[%s208_s27 + $0x8] sm:$0xff] %v298_v10 }
  0xee PF: > { %s13_s14 = sadd.s32 1, %s455_s14   ;;  %s522_s12 = smov %s451_s13 }
  0xef   : > { %p10_p5 = scmp.ge.s32.totalorder %s13_s14, 4   ;;  %s523_s13 = smov %s525_s15 }
  0xf1   :  { %12 = sbr.rel (!%p10_p5) target bundleno = 2 (0x2), region = 62 }

</bundles_post_ra>
